<compile_context>
chip_gen: v7x
topology: tpu7x:2x2x1
jax: 0.10.0
libtpu: 0.0.40
codegen_flags: <defaults>
</compile_context>

<pallas_src>
import jax
import jax.numpy as jnp
from jax.experimental import pallas as pl
from jax.experimental.pallas import tpu as pltpu

Y_LOW = 1.0
Y_HIGH = 10.5


def book_model_kernel(xt_ref, uet_ref, bet_ref, o_ref):
    # xt_ref : [2, TB] int32      (row 0 = user ids, row 1 = book ids; batch on lanes)
    # uet_ref: [D_pad, n_users]   (augmented user table, transposed, VMEM-resident)
    # bet_ref: [D_pad, n_books]   (augmented book table, transposed, VMEM-resident)
    # o_ref  : [1, TB] f32        (lane-dense output row)
    tb = xt_ref.shape[1]
    n_users = uet_ref.shape[1]
    n_books = bet_ref.shape[1]
    tdt = uet_ref.dtype

    uid = xt_ref[0:1, :]  # [1, TB]
    bid = xt_ref[1:2, :]  # [1, TB]

    # One-hot gather (vocab on sublanes, batch on lanes) -> MXU matmul gather.
    u_oh = (jax.lax.broadcasted_iota(jnp.int32, (n_users, tb), 0) == uid).astype(tdt)
    b_oh = (jax.lax.broadcasted_iota(jnp.int32, (n_books, tb), 0) == bid).astype(tdt)

    users = jnp.dot(uet_ref[...], u_oh, preferred_element_type=jnp.float32)  # [D_pad, TB]
    books = jnp.dot(bet_ref[...], b_oh, preferred_element_type=jnp.float32)  # [D_pad, TB]

    # Column-wise dot of the augmented vectors == sum(ue*be) + u_bias + b_bias
    # (the zero-padding rows contribute nothing).
    result = jnp.sum(users * books, axis=0, keepdims=True)                   # [1, TB]
    y = jax.nn.sigmoid(result) * (Y_HIGH - Y_LOW) + Y_LOW
    o_ref[...] = y.astype(o_ref.dtype)


def prepare_tables(user_embed, user_bias, book_embed, book_bias,
                   *, table_dtype=jnp.float32):
    """Fold biases into the tables and transpose to [D_pad, vocab].

    Hoisted out of the forward path: call once and reuse across forward calls.
    """
    f32 = jnp.float32
    n_users, n_embed = user_embed.shape
    n_books, _ = book_embed.shape
    d_aug = n_embed + 2
    d_pad = ((d_aug + 7) // 8) * 8  # clean sublane multiple (34 -> 40)

    ue = jnp.concatenate(
        [user_embed.astype(f32), user_bias.astype(f32), jnp.ones((n_users, 1), f32)],
        axis=1)                                                   # [n_users, D+2]
    be = jnp.concatenate(
        [book_embed.astype(f32), jnp.ones((n_books, 1), f32), book_bias.astype(f32)],
        axis=1)                                                   # [n_books, D+2]
    if d_pad != d_aug:
        ue = jnp.pad(ue, ((0, 0), (0, d_pad - d_aug)))
        be = jnp.pad(be, ((0, 0), (0, d_pad - d_aug)))
    return ue.T.astype(table_dtype), be.T.astype(table_dtype)    # [D_pad, vocab]


def _choose_tile_b(batch, max_tile_b=2048):
    # Lane-aligned (multiple of 128) tile, capped so there are >= 2 grid steps
    # whenever possible (feeds both v7x TensorCores via the "parallel" axis).
    half = -(-batch // 2)
    tile = ((half + 127) // 128) * 128
    return max(128, min(max_tile_b, tile))


def book_model_forward(x, uet, bet, *, tile_b=None, max_tile_b=2048):
    B = x.shape[0]
    d_pad, n_users = uet.shape
    _, n_books = bet.shape
    f32 = jnp.float32

    if tile_b is None:
        tile_b = _choose_tile_b(B, max_tile_b)
    b_pad = ((B + tile_b - 1) // tile_b) * tile_b
    num_tiles = b_pad // tile_b

    # Batch on lanes; padded lanes reuse id 0 and are sliced off afterwards.
    xt = x.astype(jnp.int32).T  # [2, B]
    if b_pad != B:
        xt = jnp.pad(xt, ((0, 0), (0, b_pad - B)))

    # VMEM budget: tables (single-buffered) + one-hot / gathered intermediates
    # + pipelined id/output tiles, with headroom; capped at v7x's 64 MiB.
    itemsize = jnp.dtype(uet.dtype).itemsize
    table_bytes = (n_users + n_books) * d_pad * itemsize
    work_bytes = (n_users + n_books + 2 * d_pad) * tile_b * 4
    io_bytes = 2 * (2 * tile_b * 4 + tile_b * 4)
    vmem_limit = int(min(max(1.5 * (table_bytes + work_bytes + io_bytes),
                             32 * 1024 * 1024), 64 * 1024 * 1024))

    y_row = pl.pallas_call(
        book_model_kernel,
        out_shape=jax.ShapeDtypeStruct((1, b_pad), f32),
        grid_spec=pltpu.PrefetchScalarGridSpec(
            num_scalar_prefetch=0,
            grid=(num_tiles,),
            in_specs=[
                pl.BlockSpec((2, tile_b), lambda i: (0, i)),          # ids tile
                # Tables are grid-invariant (fetched once): single-buffer them
                # so their VMEM footprint is 1x, not 2x.
                pl.BlockSpec((d_pad, n_users), lambda i: (0, 0),
                             pipeline_mode=pl.Buffered(1)),
                pl.BlockSpec((d_pad, n_books), lambda i: (0, 0),
                             pipeline_mode=pl.Buffered(1)),
            ],
            out_specs=pl.BlockSpec((1, tile_b), lambda i: (0, i)),    # lane-dense output
        ),
        compiler_params=pltpu.CompilerParams(
            dimension_semantics=("parallel",),
            vmem_limit_bytes=vmem_limit,
        ),
    )(xt, uet, bet)

    return y_row.reshape(b_pad)[:B].reshape(B, 1)


def truncated_normal_init(key, shape, std=0.01, mean=0.0):
    # Mimics truncated_normal_: normal -> fmod(2) -> *std -> +mean
    v = jax.random.normal(key, shape, dtype=jnp.float32)
    return jnp.fmod(v, 2.0) * std + mean


def reference_forward(x, user_embed, user_bias, book_embed, book_bias):
    users = user_embed[x[:, 0]]
    books = book_embed[x[:, 1]]
    result = jnp.sum(users * books, axis=1, keepdims=True)
    result = result + user_bias[x[:, 0]] + book_bias[x[:, 1]]
    return jax.nn.sigmoid(result) * (Y_HIGH - Y_LOW) + Y_LOW


if __name__ == "__main__":
    n_users, n_books, n_embed = 64, 96, 32
    batch = 300  # ragged -> exercises padding + a 2-step "parallel" grid

    key = jax.random.PRNGKey(0)
    k_ue, k_ub, k_be, k_bb, k_u, k_b = jax.random.split(key, 6)

    user_embed = truncated_normal_init(k_ue, (n_users, n_embed))
    user_bias = truncated_normal_init(k_ub, (n_users, 1))
    book_embed = truncated_normal_init(k_be, (n_books, n_embed))
    book_bias = truncated_normal_init(k_bb, (n_books, 1))

    uid = jax.random.randint(k_u, (batch,), 0, n_users, dtype=jnp.int32)
    bid = jax.random.randint(k_b, (batch,), 0, n_books, dtype=jnp.int32)
    x = jnp.stack([uid, bid], axis=1)  # [B, 2] int32

    # Table prep is done ONCE, outside the per-call forward path.
    uet, bet = prepare_tables(user_embed, user_bias, book_embed, book_bias)

    y = book_model_forward(x, uet, bet)
    y = jax.block_until_ready(y)

    y_ref = reference_forward(x, user_embed, user_bias, book_embed, book_bias)
    assert y.shape == (batch, 1)
    assert jnp.allclose(y, y_ref, atol=1e-5, rtol=1e-5)

    print("KERNEL_OK")
</pallas_src>

<mosaic_0001>
module attributes {stable_mosaic.version = 11 : i64} {
  func.func @book_model_kernel(%arg0: i32, %arg1: memref<2x256xi32, #tpu.memory_space<vmem>>, %arg2: memref<40x64xf32, #tpu.memory_space<vmem>>, %arg3: memref<40x96xf32, #tpu.memory_space<vmem>>, %arg4: memref<1x256xf32, #tpu.memory_space<vmem>>) attributes {dimension_semantics = [#tpu.dimension_semantics<parallel>], iteration_bounds = array<i64: 2>, scalar_prefetch = 0 : i64, scratch_operands = 0 : i64, tpu.core_type = #tpu.core_type<tc>, window_params = [{transform_indices = @transform_0, window_bounds = array<i64: 2, 256>}, {pipeline_mode = #tpu.pipeline_mode<synchronous>, transform_indices = @transform_1, window_bounds = array<i64: 40, 64>}, {pipeline_mode = #tpu.pipeline_mode<synchronous>, transform_indices = @transform_2, window_bounds = array<i64: 40, 96>}, {transform_indices = @transform_3, window_bounds = array<i64: 1, 256>}]} {
    %c0 = arith.constant 0 : index
    %c0_0 = arith.constant 0 : index
    %0 = vector.load %arg1[%c0, %c0_0] : memref<2x256xi32, #tpu.memory_space<vmem>>, vector<1x256xi32>
    %c1 = arith.constant 1 : index
    %c0_1 = arith.constant 0 : index
    %1 = vector.load %arg1[%c1, %c0_1] : memref<2x256xi32, #tpu.memory_space<vmem>>, vector<1x256xi32>
    %2 = tpu.iota {dimensions = array<i32: 0>} : vector<64x256xi32>
    %3 = vector.broadcast %0 : vector<1x256xi32> to vector<64x256xi32>
    %4 = arith.cmpi eq, %2, %3 : vector<64x256xi32>
    %5 = arith.extui %4 : vector<64x256xi1> to vector<64x256xi32>
    %6 = arith.sitofp %5 : vector<64x256xi32> to vector<64x256xf32>
    %7 = tpu.iota {dimensions = array<i32: 0>} : vector<96x256xi32>
    %8 = vector.broadcast %1 : vector<1x256xi32> to vector<96x256xi32>
    %9 = arith.cmpi eq, %7, %8 : vector<96x256xi32>
    %10 = arith.extui %9 : vector<96x256xi1> to vector<96x256xi32>
    %11 = arith.sitofp %10 : vector<96x256xi32> to vector<96x256xf32>
    %c0_2 = arith.constant 0 : index
    %c0_3 = arith.constant 0 : index
    %12 = vector.load %arg2[%c0_2, %c0_3] : memref<40x64xf32, #tpu.memory_space<vmem>>, vector<40x64xf32>
    %cst = arith.constant dense<0.000000e+00> : vector<40x256xf32>
    %13 = tpu.matmul %12, %6, %cst {dimension_numbers = #tpu.dot_dimension_numbers<[1], [0], [0], [1], [0, 0, 1, 1], [], []>} : vector<40x64xf32>, vector<64x256xf32>, vector<40x256xf32> -> vector<40x256xf32>
    %c0_4 = arith.constant 0 : index
    %c0_5 = arith.constant 0 : index
    %14 = vector.load %arg3[%c0_4, %c0_5] : memref<40x96xf32, #tpu.memory_space<vmem>>, vector<40x96xf32>
    %cst_6 = arith.constant dense<0.000000e+00> : vector<40x256xf32>
    %15 = tpu.matmul %14, %11, %cst_6 {dimension_numbers = #tpu.dot_dimension_numbers<[1], [0], [0], [1], [0, 0, 1, 1], [], []>} : vector<40x96xf32>, vector<96x256xf32>, vector<40x256xf32> -> vector<40x256xf32>
    %16 = arith.mulf %13, %15 : vector<40x256xf32>
    %cst_7 = arith.constant dense<0.000000e+00> : vector<256xf32>
    %17 = vector.multi_reduction <add>, %16, %cst_7 [0] : vector<40x256xf32> to vector<256xf32>
    %18 = vector.shape_cast %17 : vector<256xf32> to vector<1x256xf32>
    %19 = arith.negf %18 : vector<1x256xf32>
    %20 = math.exp %19 : vector<1x256xf32>
    %cst_8 = arith.constant 1.000000e+00 : f32
    %21 = vector.broadcast %cst_8 : f32 to vector<1x256xf32>
    %22 = arith.addf %21, %20 : vector<1x256xf32>
    %23 = arith.divf %21, %22 : vector<1x256xf32>
    %cst_9 = arith.constant 9.500000e+00 : f32
    %24 = vector.broadcast %cst_9 : f32 to vector<1x256xf32>
    %25 = arith.mulf %23, %24 : vector<1x256xf32>
    %cst_10 = arith.constant 1.000000e+00 : f32
    %26 = vector.broadcast %cst_10 : f32 to vector<1x256xf32>
    %27 = arith.addf %25, %26 : vector<1x256xf32>
    %c0_11 = arith.constant 0 : index
    %c0_12 = arith.constant 0 : index
    %28 = vector.load %arg4[%c0_11, %c0_12] : memref<1x256xf32, #tpu.memory_space<vmem>>, vector<1x256xf32>
    tpu.vector_store %arg4[%c0_11, %c0_12], %27 {strides = array<i32>} : memref<1x256xf32, #tpu.memory_space<vmem>>, vector<1x256xf32>,
    return
  }
  func.func @transform_0(%arg0: i32) -> (i32, i32) {
    %c0_i32 = arith.constant 0 : i32
    %c0_i32_0 = arith.constant 0 : i32
    return %c0_i32, %arg0 : i32, i32
  }
  func.func @transform_1(%arg0: i32) -> (i32, i32) {
    %c0_i32 = arith.constant 0 : i32
    %c0_i32_0 = arith.constant 0 : i32
    %c0_i32_1 = arith.constant 0 : i32
    return %c0_i32, %c0_i32_0 : i32, i32
  }
  func.func @transform_2(%arg0: i32) -> (i32, i32) {
    %c0_i32 = arith.constant 0 : i32
    %c0_i32_0 = arith.constant 0 : i32
    %c0_i32_1 = arith.constant 0 : i32
    return %c0_i32, %c0_i32_0 : i32, i32
  }
  func.func @transform_3(%arg0: i32) -> (i32, i32) {
    %c0_i32 = arith.constant 0 : i32
    %c0_i32_0 = arith.constant 0 : i32
    return %c0_i32, %arg0 : i32, i32
  }
}

</mosaic_0001>

<bundles_post_ra>
// kernel: tpu_custom_call.1
= control target key start
LH: loop header
LB: loop body
LE: loop exit
PB: predicated region body
PF: predicated region fallthrough
CT: control target
= control target key end

     0   :  { %8 = vsyncpa [#allocation3], 0  ;;  %s1547_s0 = inlined_call_operand.hbm [shape: s32[2,512], index: 0, kind: input, shape index: {}]   ;;  %s1548_s1 = inlined_call_operand.hbm [shape: f32[40,64], index: 1, kind: input, shape index: {}]   ;;  %s1549_s2 = inlined_call_operand.hbm [shape: f32[40,96], index: 2, kind: input, shape index: {}]   ;;  %s1550_s3 = inlined_call_operand.hbm [shape: f32[1,512], index: 3, kind: output, shape index: {}]  }
   0x1   :  { %10 = vsyncpa [#allocation3 + $0x1], 0 }
   0x2   :  { %11 = vsyncpa [#allocation6], 0 }
   0x3   :  { %12 = vsyncpa [#allocation4], 0 }
   0x4   :  { %14 = vsyncpa [#allocation4 + $0x1], 0  ;;  %s1195_s12 = smov 0   ;;  %s1197_s13 = smov 0  }
   0x5   :  { %s1199_s14 = smov 0   ;;  %s1201_s15 = smov 0  }
   0x6 LB: > { %s1216_s16 = sadd.s32 4294967295, %s1164_s15   ;;  %s775_s17 = sadd.s32 4294967294, %s1164_s15   ;;  %s1164_s15 = sphi %s1201_s15, %s1570_s15   ;;  %s1160_s14 = sphi %s1199_s14, %s1569_s14   ;;  %s1156_s13 = sphi %s1197_s13, %s1568_s13   ;;  %s1152_s12 = sphi %s1195_s12, %s1567_s12  }
   0x7   : > { %p40_p0 = scmp.ne.s32.totalorder %s1156_s13, %s1152_s12  ;;  %p1551_p1 = scmp.eq.s32.totalorder %s1216_s16, 0 }
   0x8   : > { %p112_p3 = scmp.eq.s32.totalorder %s775_s17, 1  ;;  %p776_p5 = scmp.ge.s32.totalorder %s1164_s15, 1 }
   0x9   : > { %p1225_p4 = por %p1551_p1, %p40_p0  ;;  %p119_p7 = scmp.lt.s32.totalorder %s1164_s15, 3 }
   0xa   : > { %p1230_p6 = por %p112_p3, %p40_p0  ;;  %s1166_s21 = smov [#allocation5]  }
   0xb   : > { %s1554_s18 = scalar_select %p1225_p4, 1, 0 }
   0xc   : > { %s1555_s19 = scalar_select %p1230_p6, 1, 0 }
   0xd   : > { %p1235_p8 = pnand %p776_p5, %p119_p7  ;;  %s131_s22 = sshll.u32 %s1166_s21, 4  ;;  %s1239_s22 = int_to_ptr.vmem [resolvable:$true] %s131_s22 }
   0xe   : > { %s1167_s24 = smov [#allocation7]   ;;  %s1008_s28 = scalar_lea.hbm %s1548_s1, 640 }
   0xf   : > { %p940_p9 = pneg %p1235_p8  ;;  %s144_s25 = sshll.u32 %s1167_s24, 4  ;;  %s1250_s25 = int_to_ptr.vmem [resolvable:$true] %s144_s25 }
  0x10   : > { %p1009_p12 = scmp.ne.s32.totalorder %s1548_s1, %s1008_s28  ;;  %p1015_p5 = scmp.lt.u32.totalorder %s1008_s28, %s1548_s1 }
  0x11   : > { %p1246_p11 = pnand %p940_p9, %p1551_p1 }
  0x13   : > { %p1010_p13 = pneg %p1246_p11 }
  0x15   : > { %p1011_p0 = pnand %p1010_p13, %p1009_p12 }
  0x17   : > { %p1012_p3 = pneg %p1011_p0 }
  0x19   : > { %p1017_p7 = pnand %p1015_p5, %p1012_p3 }
  0x1b   : > { %1020 = shalt.err (!%p1017_p7)
}
  0x1c   : > { %s1021_s6 = scalar_lea.vmem %s1239_s22, 640  ;;  %p1029_p2 = scmp.lt.s32.totalorder %s1239_s22, %s1239_s22 }
  0x1d   : > { %p1022_p9 = scmp.ne.s32.totalorder %s1239_s22, %s1021_s6  ;;  %p1030_p12 = scmp.lt.s32.totalorder %s1021_s6, %s1021_s6 }
  0x1f   : > { %p1024_p10 = pnand %p1022_p9, %p1010_p13  ;;  %p1031_p0 = por %p1030_p12, %p1029_p2 }
  0x21   : > { %p1025_p1 = pneg %p1024_p10 }
  0x23   : > { %p1032_p6 = pnand %p1031_p0, %p1025_p1 }
  0x25   : > { %1035 = shalt.err (!%p1032_p6)
}
  0x26   : > { %s1168_s7 = smov 128   ;;  %s1169_s8 = smov 8  }
  0x27   : > { %943 = dma.hbm_to_vmem [thread:$0]  (!%p1246_p11), %s1548_s1, 640, %s1239_s22, [#allocation6], %s1168_s7, %s1168_s7, %s1169_s8  }
  0x28   : > { %s1036_s21 = scalar_lea.hbm %s1549_s2, 640 }
  0x29   : > { %p1037_p2 = scmp.ne.s32.totalorder %s1549_s2, %s1036_s21  ;;  %p1043_p10 = scmp.lt.u32.totalorder %s1036_s21, %s1549_s2 }
  0x2b   : > { %p1039_p1 = pnand %p1037_p2, %p1010_p13 }
  0x2d   : > { %p1040_p6 = pneg %p1039_p1 }
  0x2f   : > { %p1045_p3 = pnand %p1043_p10, %p1040_p6 }
  0x31   : > { %1048 = shalt.err (!%p1045_p3)
}
  0x32   : > { %s1049_s22 = scalar_lea.vmem %s1250_s25, 640  ;;  %p1057_p12 = scmp.lt.s32.totalorder %s1250_s25, %s1250_s25 }
  0x33   : > { %p1050_p5 = scmp.ne.s32.totalorder %s1250_s25, %s1049_s22  ;;  %p1058_p0 = scmp.lt.s32.totalorder %s1049_s22, %s1049_s22 }
  0x35   : > { %p1052_p7 = pnand %p1050_p5, %p1010_p13  ;;  %p1059_p2 = por %p1058_p0, %p1057_p12 }
  0x37   : > { %p1053_p9 = pneg %p1052_p7 }
  0x39   : > { %p1060_p1 = pnand %p1059_p2, %p1053_p9 }
  0x3b   : > { %1063 = shalt.err (!%p1060_p1)
}
  0x3c   : > { %946 = dma.hbm_to_vmem [thread:$0]  (!%p1246_p11), %s1549_s2, 640, %s1250_s25, [#allocation6], %s1168_s7, %s1168_s7, %s1169_s8  }
  0x3d   : > { %s1305_s4 = sadd.s32 1, %s1164_s15   ;;  %s27_s23 = sadd.s32 1, %s1160_s14 }
  0x3e   : > { %s24_s5 = ssub.s32 %s1164_s15, %s1305_s4  ;;  %p34_p13 = scmp.ne.s32.totalorder %s1160_s14, %s1156_s13 }
  0x3f   : > { %p25_p6 = scmp.eq.s32.totalorder %s24_s5, 0  ;;  %p35_p10 = scmp.eq.s32.totalorder %s1164_s15, 0 }
  0x40   : > { %p1558_p3 = scmp.eq.s32.totalorder %s1216_s16, 1  ;;  %p957_p7 = scmp.lt.s32.totalorder %s1164_s15, 2 }
  0x41   : > { %s1321_s9 = scalar_select %p25_p6, %s1160_s14, %s27_s23  }
  0x42   : > { %p1315_p5 = por %p1558_p3, %p34_p13  ;;  %p36_p9 = por %p35_p10, %p34_p13 }
  0x43   : > { %s158_s10 = sand.u32 1, %s1160_s14   ;;  %s886_s25 = sshll.u32 %s1164_s15, 6 }
  0x44   : > { %s1559_s6 = scalar_select %p1315_p5, 1, 0 }
  0x45   : > { %s780_s11 = sshll.u32 %s158_s10, 2  ;;  %s1328_s17 = scalar_lea.hbm %s1547_s0, %s886_s25 }
  0x46   : > { %s162_s21 = scalar_lea.vmem [#allocation2], %s780_s11  ;;  %p1332_p11 = pnand %p957_p7, %p36_p9 }
  0x47   : > { %s170_s24 = sshll.u32 %s162_s21, 4  ;;  %s159_s27 = scalar_lea.sflag [#allocation3], %s158_s10  ;;  %s1330_s24 = int_to_ptr.vmem [resolvable:$true] %s170_s24 }
  0x48   : > { %s1064_s28 = scalar_lea.hbm %s1328_s17, 64  ;;  %p1066_p0 = pneg %p1332_p11 }
  0x49   : > { %p1065_p12 = scmp.ne.s32.totalorder %s1328_s17, %s1064_s28  ;;  %s1069_s30 = scalar_lea.hbm %s1547_s0, 128 }
  0x4a   : > { %p1070_p13 = scmp.lt.u32.totalorder %s1328_s17, %s1547_s0  ;;  %p1071_p6 = scmp.lt.u32.totalorder %s1069_s30, %s1064_s28 }
  0x4b   : > { %p1067_p2 = pnand %p1066_p0, %p1065_p12  ;;  %p1073_p3 = scmp.lt.u32.totalorder %s1064_s28, %s1328_s17 }
  0x4c   : > { %p1072_p10 = por %p1071_p6, %p1070_p13 }
  0x4d   : > { %p1068_p1 = pneg %p1067_p2 }
  0x4e   : > { %p1074_p7 = por %p1073_p3, %p1072_p10 }
  0x50   : > { %p1075_p9 = pnand %p1074_p7, %p1068_p1 }
  0x52   : > { %1078 = shalt.err (!%p1075_p9)
}
  0x53   : > { %s1079_s10 = scalar_lea.vmem %s1330_s24, 64  ;;  %s1170_s11 = smov [#allocation2]  }
  0x54   : > { %p1080_p12 = scmp.ne.s32.totalorder %s1330_s24, %s1079_s10  ;;  %s1084_s25 = sshll.u32 %s1170_s11, 4  ;;  %s1085_s25 = int_to_ptr.vmem [resolvable:$false] %s1084_s25 }
  0x55   : > { %s1086_s7 = scalar_lea.vmem %s1085_s25, 128  ;;  %p1087_p4 = scmp.lt.s32.totalorder %s1330_s24, %s1085_s25 }
  0x56   : > { %p1082_p2 = pnand %p1080_p12, %p1066_p0  ;;  %p1088_p13 = scmp.lt.s32.totalorder %s1086_s7, %s1079_s10 }
  0x58   : > { %p1083_p5 = pneg %p1082_p2  ;;  %p1089_p6 = por %p1088_p13, %p1087_p4 }
  0x5a   : > { %p1090_p10 = pnand %p1089_p6, %p1083_p5 }
  0x5c   : > { %1093 = shalt.err (!%p1090_p10)
}
  0x5d   : > { %950 = dma.hbm_to_vmem [thread:$0]  (!%p1332_p11), %s1328_s17, 64, %s1330_s24, %s159_s27  }
  0x5e   : > { %179 = sbr.rel (%p1235_p8) target bundleno = 434 (0x1b2), region = 32  ;;  %s1364_s8 = sand.u32 (!%p1235_p8), 1, %s1156_s13  }
  0x5f   : > { %s784_s21 = sshll.u32 (!%p1235_p8), %s1364_s8, 2  ;;  %s182_s28 = scalar_lea.sflag (!%p1235_p8), [#allocation3], %s1364_s8 }
  0x60   : > { %s185_s22 = scalar_lea.vmem (!%p1235_p8), [#allocation2], %s784_s21  ;;  %p1561_p4 = scmp.ne.s32.totalorder (!%p1235_p8), %s1554_s18, 0 }
  0x65   : > { %1139 = dma.done.wait (%p1561_p4), %s182_s28, 64  }
  0x66   : > { %1141 = vsyncadd (%p1561_p4), %s182_s28, 4294967232  ;;  %p1562_p5 = scmp.eq.s32.totalorder %s1216_s16, 0 }
  0x68   : > { %1143 = dma.done.wait (%p1562_p5), [#allocation6], 1280   ;;  %p1563_p11 = pmov %p1562_p5 }
  0x69   : > { %v221_v0 = vlaneseq  ;;  %v1171_v1 = vmov 0.0   ;;  %v788_v8 = vld [vmem:[%s185_s22 + $0x1] ss:$2 sm:$0x3]  ;;  %v1172_v16 = vmov 1.0|1.0  }
  0x6a   : > { %1145 = vsyncadd (%p1563_p11), [#allocation6], 4294966016  ;;  %455 = vmatprep.mubr.f32.mxu0 %v1171_v1  ;;  %571 = vmatprep.mubr.f32.mxu1 %v1171_v1  ;;  %v218_v9 = vld [vmem:[%s185_s22] ss:$2 sm:$0x3]  ;;  %v370_v23 = vld [vmem:[#allocation5] sm:$0xff] }
  0x6b   : > { %v1379_v2 = vshrl.u32 %v221_v0, 7  ;;  %v486_v24 = vld [vmem:[#allocation7] sm:$0xff]  ;;  %v487_v26 = vld [vmem:[#allocation7 + $0x8] sm:$0xff]  ;;  %v488_v28 = vld [vmem:[#allocation7 + $0x10] sm:$0xff]  ;;  %s787_s18 = sshll.u32 %s1364_s8, 1  ;;  %s887_s20 = sshll.u32 %s1216_s16, 5 }
  0x6c   : > { %v371_v25 = vld [vmem:[#allocation5 + $0x8] sm:$0xff]  ;;  %v372_v27 = vld [vmem:[#allocation5 + $0x10] sm:$0xff]  ;;  %v373_v29 = vld [vmem:[#allocation5 + $0x18] sm:$0xff]  ;;  %s215_s17 = scalar_lea.vmem [#allocation8], %s787_s18  ;;  %s1503_s29 = scalar_lea.hbm %s1550_s3, %s887_s20 }
  0x6d   : > { %v236_v3 = vsub.s32 1, %v1379_v2  ;;  %v232_v4 = vsub.s32 0, %v1379_v2  ;;  %v223_v5 = vadd.s32 8, %v1379_v2  ;;  %v224_v6 = vadd.s32 16, %v1379_v2  ;;  %v489_v30 = vld [vmem:[#allocation7 + $0x18] sm:$0xff]  ;;  %v490_v32 = vld [vmem:[#allocation7 + $0x20] sm:$0xff] }
  0x6e   : > { %v225_v7 = vadd.s32 24, %v1379_v2  ;;  %v1395_v14 = vadd.s32 32, %v1379_v2  ;;  %v1398_v15 = vadd.s32 40, %v1379_v2  ;;  %v228_v17 = vadd.s32 48, %v1379_v2  ;;  %v374_v31 = vld [vmem:[#allocation5 + $0x20] sm:$0xff]  ;;  %s686_s24 = sshll.u32 %s215_s17, 4  ;;  %s1505_s24 = int_to_ptr.vmem [resolvable:$true] %s686_s24 }
  0x6f   : > { %v1386_v10 = vrot.slane %v788_v8, %v236_v3  ;;  %v1388_v11 = vrot.slane %v788_v8, %v232_v4  ;;  %v1390_v12 = vrot.slane %v218_v9, %v236_v3  ;;  %v1392_v13 = vrot.slane %v218_v9, %v232_v4  ;;  %s672_s30 = scalar_lea.sflag [#allocation4], %s1364_s8  ;;  %s1094_s23 = scalar_lea.vmem %s1505_s24, 32 }
  0x70   : > { %v229_v18 = vadd.s32 56, %v1379_v2  ;;  %v286_v19 = vadd.s32 64, %v1379_v2  ;;  %v287_v20 = vadd.s32 72, %v1379_v2  ;;  %v288_v21 = vadd.s32 80, %v1379_v2  ;;  %p1095_p8 = scmp.ne.s32.totalorder %s1505_s24, %s1094_s23  ;;  %p1564_p0 = scmp.ne.s32.totalorder %s1559_s6, 0 }
  0x71   : > { %vm299_vm0 = vcmp.eq.s32.totalorder %v1379_v2, %v1386_v10  ;;  %vm301_vm1 = vcmp.eq.s32.totalorder %v223_v5, %v1386_v10  ;;  %vm298_vm2 = vcmp.eq.s32.totalorder %v1379_v2, %v1388_v11  ;;  %vm300_vm3 = vcmp.eq.s32.totalorder %v223_v5, %v1388_v11  ;;  %s1174_s16 = smov [#allocation8]  }
  0x72   : > { %vm904_vm4 = vmpackc.low %vm301_vm1, %vm299_vm0  ;;  %vm303_vm5 = vcmp.eq.s32.totalorder %v224_v6, %v1386_v10  ;;  %vm305_vm6 = vcmp.eq.s32.totalorder %v225_v7, %v1386_v10  ;;  %vm302_vm7 = vcmp.eq.s32.totalorder %v224_v6, %v1388_v11  ;;  %vm304_vm8 = vcmp.eq.s32.totalorder %v225_v7, %v1388_v11  ;;  %p1096_p1 = pnand %p1095_p8, %p1564_p0  ;;  %s1098_s5 = sshll.u32 %s1174_s16, 4  ;;  %s1099_s5 = int_to_ptr.vmem [resolvable:$false] %s1098_s5 }
  0x73   : > { %905 = vmatprep.subr.msk.bf16.mxu1 %vm904_vm4, %v1172_v16  ;;  %vm906_vm9 = vmpackc.low %vm300_vm3, %vm298_vm2  ;;  %vm239_vm10 = vcmp.eq.s32.totalorder %v1379_v2, %v1390_v12  ;;  %vm241_vm11 = vcmp.eq.s32.totalorder %v223_v5, %v1390_v12  ;;  %vm238_vm13 = vcmp.eq.s32.totalorder %v1379_v2, %v1392_v13  ;;  %vm240_vm14 = vcmp.eq.s32.totalorder %v223_v5, %v1392_v13  ;;  %s1100_s10 = scalar_lea.vmem %s1099_s5, 64  ;;  %p1101_p7 = scmp.lt.s32.totalorder %s1505_s24, %s1099_s5 }
  0x74   : > { %907 = vmatpush1.bf16.msk.msra.mxu1 %vm906_vm9, %v1172_v16  ;;  %vm908_vm12 = vmpackc.low %vm305_vm6, %vm303_vm5  ;;  %vm307_vm0 = vcmp.eq.s32.totalorder %v1395_v14, %v1386_v10  ;;  %vm309_vm1 = vcmp.eq.s32.totalorder %v1398_v15, %v1386_v10  ;;  %vm306_vm3 = vcmp.eq.s32.totalorder %v1395_v14, %v1388_v11  ;;  %vm308_vm4 = vcmp.eq.s32.totalorder %v1398_v15, %v1388_v11  ;;  %p1097_p3 = pneg %p1096_p1  ;;  %p1102_p9 = scmp.lt.s32.totalorder %s1100_s10, %s1094_s23 }
  0x75   : > { %909 = vmatprep.subr.msk.bf16.mxu1 %vm908_vm12, %v1172_v16  ;;  %vm910_vm15 = vmpackc.low %vm304_vm8, %vm302_vm7  ;;  %vm243_vm6 = vcmp.eq.s32.totalorder %v224_v6, %v1390_v12  ;;  %vm245_vm7 = vcmp.eq.s32.totalorder %v225_v7, %v1390_v12  ;;  %vm242_vm9 = vcmp.eq.s32.totalorder %v224_v6, %v1392_v13  ;;  %vm311_vm12 = vcmp.eq.s32.totalorder %v228_v17, %v1386_v10 }
  0x76   : > { %vm888_vm2 = vmpackc.low %vm241_vm11, %vm239_vm10  ;;  %vm244_vm10 = vcmp.eq.s32.totalorder %v225_v7, %v1392_v13  ;;  %v289_v22 = vadd.s32 88, %v1379_v2  ;;  %p1103_p12 = por %p1102_p9, %p1101_p7 }
  0x77   : > { %889 = vmatprep.subr.msk.bf16.mxu0 %vm888_vm2, %v1172_v16  ;;  %vm890_vm5 = vmpackc.low %vm240_vm14, %vm238_vm13  ;;  %vm313_vm13 = vcmp.eq.s32.totalorder %v229_v18, %v1386_v10  ;;  %vm247_vm2 = vcmp.eq.s32.totalorder %v1395_v14, %v1390_v12 }
  0x78   : > { %911 = vmatpush1.bf16.msk.msra.mxu1 %vm910_vm15, %v1172_v16  ;;  %891 = vmatpush1.bf16.msk.msra.mxu0 %vm890_vm5, %v1172_v16  ;;  %vm912_vm8 = vmpackc.low %vm309_vm1, %vm307_vm0  ;;  %vm310_vm15 = vcmp.eq.s32.totalorder %v228_v17, %v1388_v11  ;;  %vm312_vm0 = vcmp.eq.s32.totalorder %v229_v18, %v1388_v11  ;;  %vm246_vm5 = vcmp.eq.s32.totalorder %v1395_v14, %v1392_v13  ;;  %p1104_p2 = pnand %p1103_p12, %p1097_p3 }
  0x79   : > { %913 = vmatprep.subr.msk.bf16.mxu1 %vm912_vm8, %v1172_v16  ;;  %vm914_vm11 = vmpackc.low %vm308_vm4, %vm306_vm3  ;;  %vm249_vm3 = vcmp.eq.s32.totalorder %v1398_v15, %v1390_v12  ;;  %vm315_vm8 = vcmp.eq.s32.totalorder %v286_v19, %v1386_v10 }
  0x7a   : > { %vm892_vm14 = vmpackc.low %vm245_vm7, %vm243_vm6  ;;  %vm248_vm6 = vcmp.eq.s32.totalorder %v1398_v15, %v1392_v13 }
  0x7b   : > { %893 = vmatprep.subr.msk.bf16.mxu0 %vm892_vm14, %v1172_v16  ;;  %vm894_vm1 = vmpackc.low %vm244_vm10, %vm242_vm9  ;;  %vm317_vm9 = vcmp.eq.s32.totalorder %v287_v20, %v1386_v10  ;;  %vm251_vm14 = vcmp.eq.s32.totalorder %v228_v17, %v1390_v12 }
  0x7c   : > { %915 = vmatpush1.bf16.msk.msra.mxu1 %vm914_vm11, %v1172_v16  ;;  %895 = vmatpush1.bf16.msk.msra.mxu0 %vm894_vm1, %v1172_v16  ;;  %vm916_vm4 = vmpackc.low %vm313_vm13, %vm311_vm12  ;;  %vm314_vm11 = vcmp.eq.s32.totalorder %v286_v19, %v1388_v11  ;;  %vm316_vm12 = vcmp.eq.s32.totalorder %v287_v20, %v1388_v11  ;;  %vm250_vm1 = vcmp.eq.s32.totalorder %v228_v17, %v1392_v13 }
  0x7d   : > { %917 = vmatprep.subr.msk.bf16.mxu1 %vm916_vm4, %v1172_v16  ;;  %vm918_vm7 = vmpackc.low %vm312_vm0, %vm310_vm15  ;;  %vm253_vm15 = vcmp.eq.s32.totalorder %v229_v18, %v1390_v12  ;;  %vm319_vm4 = vcmp.eq.s32.totalorder %v288_v21, %v1386_v10 }
  0x7e   : > { %vm896_vm10 = vmpackc.low %vm249_vm3, %vm247_vm2  ;;  %vm252_vm2 = vcmp.eq.s32.totalorder %v229_v18, %v1392_v13 }
  0x7f   : > { %897 = vmatprep.subr.msk.bf16.mxu0 %vm896_vm10, %v1172_v16  ;;  %vm898_vm13 = vmpackc.low %vm248_vm6, %vm246_vm5  ;;  %vm321_vm5 = vcmp.eq.s32.totalorder %v289_v22, %v1386_v10  ;;  %vm318_vm10 = vcmp.eq.s32.totalorder %v288_v21, %v1388_v11 }
  0x80   : > { %919 = vmatpush1.bf16.msk.msra.mxu1 %vm918_vm7, %v1172_v16  ;;  %899 = vmatpush1.bf16.msk.msra.mxu0 %vm898_vm13, %v1172_v16  ;;  %vm920_vm0 = vmpackc.low %vm317_vm9, %vm315_vm8  ;;  %vm320_vm7 = vcmp.eq.s32.totalorder %v289_v22, %v1388_v11  ;;  %vm375_vm9 = vcmask 523264  }
  0x81   : > { %921 = vmatprep.subr.msk.bf16.mxu1 %vm920_vm0, %v1172_v16  ;;  %vm922_vm3 = vmpackc.low %vm316_vm12, %vm314_vm11  ;;  %vm491_vm12 = vcmask 785408  }
  0x82   : > { %vm900_vm6 = vmpackc.low %vm253_vm15, %vm251_vm14  ;;  %vm668_vm14 = vcmp.lt.s32.totalorder %v221_v0, 256 }
  0x83   : > { %901 = vmatprep.subr.msk.bf16.mxu0 %vm900_vm6, %v1172_v16  ;;  %vm902_vm13 = vmpackc.low %vm252_vm2, %vm250_vm1 }
  0x84   : > { %923 = vmatpush1.bf16.msk.msra.mxu1 %vm922_vm3, %v1172_v16  ;;  %903 = vmatpush1.bf16.msk.msra.mxu0 %vm902_vm13, %v1172_v16  ;;  %vm924_vm8 = vmpackc.low %vm321_vm5, %vm319_vm4 }
  0x85   : > { %925 = vmatprep.subr.msk.bf16.mxu1 %vm924_vm8, %v1172_v16  ;;  %vm926_vm11 = vmpackc.low %vm320_vm7, %vm318_vm10 }
  0x87   : > { %845 = vmatmul.mubr.msk.f32.vlgmr.msra.gmra.mrb[0].mxu0 %vm375_vm9, %v370_v23 }
  0x88   : > { %927 = vmatpush1.bf16.msk.msra.mxu1 %vm926_vm11, %v1172_v16  ;;  %461 = vmatprep.mubr.f32.mxu0 %v1171_v1 }
  0x8b   : > { %874 = vmatmul.mubr.msk.f32.vlgmr.msra.gmra.mrb[0].mxu1 %vm491_vm12, %v486_v24  ;;  %846 = vmatmul.mubr.msk.f32.gmra.mrb[2].mxu0 %vm375_vm9, %v371_v25 }
  0x8c   : > { %577 = vmatprep.mubr.f32.mxu1 %v1171_v1  ;;  %467 = vmatprep.mubr.f32.mxu0 %v1171_v1 }
  0x8f   : > { %875 = vmatmul.mubr.msk.f32.gmra.mrb[2].mxu1 %vm491_vm12, %v487_v26  ;;  %847 = vmatmul.mubr.msk.f32.gmra.mrb[4].mxu0 %vm375_vm9, %v372_v27  ;;  %v1173_v27 = vmov 1966171168  }
  0x90   : > { %583 = vmatprep.mubr.f32.mxu1 %v1171_v1  ;;  %473 = vmatprep.mubr.f32.mxu0 %v1171_v1 }
  0x93   : > { %876 = vmatmul.mubr.msk.f32.gmra.mrb[4].mxu1 %vm491_vm12, %v488_v28  ;;  %848 = vmatmul.mubr.msk.f32.gmra.mrb[6].mxu0 %vm375_vm9, %v373_v29  ;;  %v652_v28 = vunpack.c.l.s4 %v1173_v27 }
  0x94   : > { %589 = vmatprep.mubr.f32.mxu1 %v1171_v1  ;;  %479 = vmatprep.mubr.f32.mxu0 %v1171_v1 }
  0x97   : > { %877 = vmatmul.mubr.msk.f32.gmra.mrb[6].mxu1 %vm491_vm12, %v489_v30  ;;  %849 = vmatmul.mubr.msk.f32.gmra.mrb[8].mxu0 %vm375_vm9, %v374_v31  ;;  %v653_v30 = vunpack.c.0.s8 %v652_v28 }
  0x98   : > { %595 = vmatprep.mubr.f32.mxu1 %v1171_v1 }
  0x9b   : > { %878 = vmatmul.mubr.msk.f32.gmra.mrb[8].mxu1 %vm491_vm12, %v490_v32 }
 0x15a   : > { %v457_v33 = vpop.f32.mrb[0].mxu0 }
 0x15b   : > { %v459_v34 = vpop.f32.mrb[1].mxu0 }
 0x15e   : > { %v573_v35 = vpop.f32.mrb[0].mxu1  ;;  %v463_v36 = vpop.f32.mrb[2].mxu0 }
 0x15f   : > { %v602_v37 = vmul.f32 %v573_v35, %v457_v33  ;;  %v575_v38 = vpop.f32.mrb[1].mxu1  ;;  %v465_v39 = vpop.f32.mrb[3].mxu0 }
 0x160   : > { %v603_v40 = vmul.f32 %v575_v38, %v459_v34 }
 0x162   : > { %v579_v41 = vpop.f32.mrb[2].mxu1  ;;  %v469_v42 = vpop.f32.mrb[4].mxu0 }
 0x163   : > { %v604_v43 = vmul.f32 %v579_v41, %v463_v36  ;;  %v581_v44 = vpop.f32.mrb[3].mxu1  ;;  %v471_v45 = vpop.f32.mrb[5].mxu0  ;;  %v656_v36 = vsub.s32 %v653_v30, %v1379_v2 }
 0x164   : > { %v605_v46 = vmul.f32 %v581_v44, %v465_v39 }
 0x165   : > { %v612_v47 = vadd.f32 %v604_v43, %v602_v37 }
 0x166   : > { %v622_v48 = vadd.f32 %v605_v46, %v603_v40  ;;  %v585_v49 = vpop.f32.mrb[4].mxu1  ;;  %v475_v50 = vpop.f32.mrb[6].mxu0 }
 0x167   : > { %v606_v51 = vmul.f32 %v585_v49, %v469_v42  ;;  %v587_v52 = vpop.f32.mrb[5].mxu1  ;;  %v477_v53 = vpop.f32.mrb[7].mxu0 }
 0x168   : > { %v607_v54 = vmul.f32 %v587_v52, %v471_v45 }
 0x169   : > { %v613_v55 = vadd.f32 %v612_v47, %v606_v51 }
 0x16a   : > { %v623_v56 = vadd.f32 %v622_v48, %v607_v54  ;;  %v591_v57 = vpop.f32.mrb[6].mxu1  ;;  %v481_v58 = vpop.f32.mrb[8].mxu0 }
 0x16b   : > { %v608_v59 = vmul.f32 %v591_v57, %v475_v50  ;;  %v593_v60 = vpop.f32.mrb[7].mxu1  ;;  %v483_v61 = vpop.f32.mrb[9].mxu0 }
 0x16c   : > { %v609_v62 = vmul.f32 %v593_v60, %v477_v53 }
 0x16d   : > { %v614_v63 = vadd.f32 %v613_v55, %v608_v59 }
 0x16e   : > { %v624_v1 = vadd.f32 %v623_v56, %v609_v62  ;;  %v597_v3 = vpop.f32.mrb[8].mxu1 }
 0x16f   : > { %v610_v4 = vmul.f32 %v597_v3, %v481_v58  ;;  %v599_v5 = vpop.f32.mrb[9].mxu1 }
 0x170   : > { %v611_v6 = vmul.f32 %v599_v5, %v483_v61 }
 0x171   : > { %v615_v7 = vadd.f32 %v614_v63, %v610_v4 }
 0x172   : > { %v625_v8 = vadd.f32 %v624_v1, %v611_v6 }
 0x173   : > { %v616_v9 = vrot.slane %v615_v7, 4 }
 0x174   : > { %v626_v10 = vrot.slane %v625_v8, 4 }
 0x175   : > { %v617_v11 = vadd.f32 %v616_v9, %v615_v7 }
 0x176   : > { %v627_v12 = vadd.f32 %v626_v10, %v625_v8 }
 0x177   : > { %v618_v13 = vrot.slane %v617_v11, 2 }
 0x178   : > { %v628_v14 = vrot.slane %v627_v12, 2 }
 0x179   : > { %v619_v15 = vadd.f32 %v618_v13, %v617_v11 }
 0x17a   : > { %v629_v16 = vadd.f32 %v628_v14, %v627_v12 }
 0x17b   : > { %v620_v17 = vrot.slane %v619_v15, 1 }
 0x17c   : > { %v630_v18 = vrot.slane %v629_v16, 1 }
 0x17d   : > { %v621_v19 = vadd.f32 %v620_v17, %v619_v15 }
 0x17e   : > { %v631_v20 = vadd.f32 %v630_v18, %v629_v16 }
 0x17f   : > { %v879_v21 = vmul.f32 -1.442695, %v621_v19 }
 0x180   : > { %v880_v22 = vmul.f32 -1.442695, %v631_v20 }
 0x181   : > { %1000 = vpow2.f32 %v879_v21 }
 0x182   : > { %1002 = vpow2.f32 %v880_v22 }
 0x18b   : > { %v1001_v23 = vpop.eup %1000 }
 0x18c   : > { %v1003_v24 = vpop.eup %1002  ;;  %v638_v25 = vadd.f32 1.0, %v1001_v23 }
 0x18d   : > { %v639_v26 = vadd.f32 1.0, %v1003_v24 }
 0x18e   : > { %1004 = vrcp.f32 %v638_v25 }
 0x18f   : > { %1006 = vrcp.f32 %v639_v26 }
 0x198   : > { %v1005_v29 = vpop.eup %1004 }
 0x199   : > { %v1007_v31 = vpop.eup %1006  ;;  %v644_v32 = vmul.f32 9.5, %v1005_v29 }
 0x19a   : > { %v645_v33 = vmul.f32 9.5, %v1007_v31 }
 0x19b   : > { %v646_v34 = vadd.f32 1.0, %v644_v32 }
 0x19c   : > { %v647_v35 = vadd.f32 1.0, %v645_v33 }
 0x19e   : > { %v650_v37 = vcombine.low %v646_v34, %v647_v35 }
 0x1a0   : > { %v657_v38 = vrot.slane %v650_v37, %v656_v36 }
 0x1a2   : > { %v664_v39 = vrot.slane %v657_v38, %v656_v36 }
 0x1a4   : > { %670 = vst.msk [vmem:[%s215_s17] sm:$0x3] %vm668_vm14, %v664_v39 }
 0x1a5   : > { %1107 = shalt.err (!%p1104_p2)
}
 0x1a6   : > { %s1108_s11 = scalar_lea.hbm %s1503_s29, 32  ;;  %s1112_s8 = scalar_lea.hbm %s1550_s3, 64 }
 0x1a7   : > { %p1109_p13 = scmp.ne.s32.totalorder %s1503_s29, %s1108_s11  ;;  %p1113_p4 = scmp.lt.u32.totalorder %s1503_s29, %s1550_s3 }
 0x1a8   : > { %p1114_p5 = scmp.lt.u32.totalorder %s1112_s8, %s1108_s11  ;;  %p1116_p8 = scmp.lt.u32.totalorder %s1108_s11, %s1503_s29 }
 0x1a9   : > { %p1110_p6 = pnand %p1109_p13, %p1564_p0 }
 0x1aa   : > { %p1115_p11 = por %p1114_p5, %p1113_p4 }
 0x1ab   : > { %p1111_p10 = pneg %p1110_p6 }
 0x1ac   : > { %p1117_p1 = por %p1116_p8, %p1115_p11 }
 0x1ae   : > { %p1118_p3 = pnand %p1117_p1, %p1111_p10 }
 0x1b0   : > { %1121 = shalt.err (!%p1118_p3)
}
 0x1b1   : > { %938 = dma.vmem_to_hbm [thread:$0]  (%p1564_p0), %s1505_s24, 32, %s1503_s29, %s672_s30  }
 0x1b2 PF: > { %s698_s22 = sand.u32 1, %s1152_s12   ;;  %p1565_p7 = scmp.ne.s32.totalorder %s1555_s19, 0 }
 0x1b3   : > { %p1566_p9 = scmp.ge.s32.totalorder %s1164_s15, 2  ;;  %s699_s18 = scalar_lea.sflag [#allocation4], %s698_s22 }
 0x1b5   : > { %p952_p12 = pnand %p1566_p9, %p1565_p7 }
 0x1b7   : > { %1147 = dma.done.wait (!%p952_p12), %s699_s18, 32  }
 0x1b8   : > { %1149 = vsyncadd (!%p952_p12), %s699_s18, 4294967264  ;;  %p17_p2 = scmp.ge.s32.totalorder %s1305_s4, 4   ;;  %s1567_s12 = smov %s1156_s13 }
 0x1b9   : > { %s1568_s13 = smov %s1160_s14  ;;  %s1569_s14 = smov %s1321_s9 }
 0x1ba   : > { %s1570_s15 = smov %s1305_s4  ;;  %19 = sbr.rel (!%p17_p2) target bundleno = 6 (0x6), region = 86 }
 0x1c1   :  { %704 = vsyncpa [#allocation3], 1 }
 0x1c2   :  { %706 = vsyncpa [#allocation3 + $0x1], 1 }
 0x1c3   :  { %707 = vsyncpa [#allocation6], 1 }
 0x1c4   :  { %708 = vsyncpa [#allocation4], 1 }
 0x1c5   :  { %710 = vsyncpa [#allocation4 + $0x1], 1 }

</bundles_post_ra>
